<compile_context>
chip_gen: v6e
topology: v6e:2x2x1
jax: 0.10.0
libtpu: 0.0.40
codegen_flags: <defaults>
</compile_context>

<pallas_src>
import math
import functools

import jax
import jax.numpy as jnp
import numpy as np
from jax.experimental import pallas as pl
from jax.experimental.pallas import tpu as pltpu

EPS = 1e-6


def _layernorm(v, a, b):
    # torch: mean(-1), std(-1) unbiased (N-1), a*(x-mean)/(std+eps)+b
    # Exact divide here (stacked layers compound approx-recip error); the
    # approx (EUP) reciprocal is kept only for the softmax denominator.
    d = v.shape[-1]
    mean = jnp.mean(v, axis=-1, keepdims=True)
    var = jnp.sum((v - mean) ** 2, axis=-1, keepdims=True) * (1.0 / (d - 1))
    std = jnp.sqrt(var)
    return a * (v - mean) / (std + EPS) + b


# --------------------------- pass 1: K / V projection ---------------------------
def _kv_proj_kernel(x_ref, ln1a_ref, ln1b_ref,
                    wk_ref, bk_ref, wv_ref, bv_ref,
                    k_out_ref, v_out_ref):
    x = x_ref[...]                                           # (TS, D) f32
    xn = _layernorm(x, ln1a_ref[...], ln1b_ref[...])
    xn_c = xn.astype(wk_ref.dtype)                           # bf16 at MXU input
    k = jnp.dot(xn_c, wk_ref[...], preferred_element_type=jnp.float32) + bk_ref[...]
    v = jnp.dot(xn_c, wv_ref[...], preferred_element_type=jnp.float32) + bv_ref[...]
    k_out_ref[...] = k.astype(k_out_ref.dtype)
    v_out_ref[...] = v.astype(v_out_ref.dtype)


# ----------------- pass 2: per-query-tile attention + FFN (fused) ----------------
def _attn_ffn_kernel(x_ref, mask_ref, k_ref, v_ref,
                     ln1a_ref, ln1b_ref, wq_ref, bq_ref,
                     wo_ref, bo_ref, ln2a_ref, ln2b_ref,
                     w1_ref, b1_ref, w2_ref, b2_ref,
                     out_ref, *, num_heads):
    x = x_ref[...]                                           # (TQ, D) f32
    m = mask_ref[...]                                        # (1, S)  f32
    k = k_ref[...]                                           # (S, D)  bf16
    v = v_ref[...]                                           # (S, D)  bf16
    TQ, D = x.shape
    S = k.shape[0]
    H = num_heads
    DK = D // H

    # ---- sublayer 0: self-attention on LayerNorm(x) ----
    xn = _layernorm(x, ln1a_ref[...], ln1b_ref[...])
    q = jnp.dot(xn.astype(wq_ref.dtype), wq_ref[...],
                preferred_element_type=jnp.float32) + bq_ref[...]
    q = (q * (1.0 / math.sqrt(DK))).astype(k.dtype)          # fold 1/sqrt(dk) into q

    # Additive mask bias, broadcast ONCE (hoisted out of the unrolled head
    # loop -- JAX does not CSE broadcast_in_dim).
    bias = jnp.broadcast_to((m - 1.0) * 1e9, (TQ, S))

    # Per-head attention with static lane slices (no (S,H,DK) reshape
    # relayouts).  Head outputs stay in registers and are concatenated into a
    # lane-dense (TQ, D) tile -- no sub-128-lane masked stores, and the Wo
    # matmul keeps its full D contraction.
    # Note: H is static; if bundle dumps ever show spill traffic from the
    # unrolled loop, bound live ranges with fori_loop / a head grid axis.
    heads = []
    for h in range(H):
        sl = slice(h * DK, (h + 1) * DK)
        qh = q[:, sl]                                        # (TQ, DK) bf16
        kh = k[:, sl]                                        # (S,  DK) bf16
        vh = v[:, sl]                                        # (S,  DK) bf16
        s = jax.lax.dot_general(qh, kh, (((1,), (1,)), ((), ())),
                                preferred_element_type=jnp.float32)   # (TQ, S)
        s = s + bias
        s = s - jnp.max(s, axis=-1, keepdims=True)
        p = jnp.exp(s)
        p = p * pl.reciprocal(jnp.sum(p, axis=-1, keepdims=True), approx=True)
        heads.append(jnp.dot(p.astype(vh.dtype), vh,
                             preferred_element_type=jnp.float32))     # (TQ, DK) f32
    attn = jnp.concatenate(heads, axis=-1)                   # (TQ, D) f32

    attn_out = jnp.dot(attn.astype(wo_ref.dtype), wo_ref[...],
                       preferred_element_type=jnp.float32) + bo_ref[...]
    x1 = x + attn_out                                        # residual (dropout = id)

    # ---- sublayer 1: feed-forward on LayerNorm(x1) ----
    xn2 = _layernorm(x1, ln2a_ref[...], ln2b_ref[...])
    hdn = jnp.dot(xn2.astype(w1_ref.dtype), w1_ref[...],
                  preferred_element_type=jnp.float32) + b1_ref[...]
    hdn = jnp.maximum(hdn, 0.0)
    ff = jnp.dot(hdn.astype(w2_ref.dtype), w2_ref[...],
                 preferred_element_type=jnp.float32) + b2_ref[...]

    out_ref[...] = (x1 + ff).astype(out_ref.dtype)


# ---------------------------------- wrapper ----------------------------------
def encoder_layer_forward(x, mask, params, *, num_heads,
                          block_q=512, block_rows=512,
                          matmul_dtype=jnp.bfloat16):
    B, S, D = x.shape
    Dff = params['w1'].shape[1]
    assert D % num_heads == 0

    # Query-row tile for pass 2 and row tile for pass 1 (decoupled).
    TQ = S if S <= block_q else block_q
    assert S % TQ == 0, "S must be divisible by the query tile"
    TS = S if S <= block_rows else block_rows
    assert S % TS == 0, "S must be divisible by the pass-1 row tile"

    md = matmul_dtype
    f32 = jnp.float32
    row = lambda p: jnp.asarray(p, f32).reshape(1, -1)       # 1-D -> (1, N) lane-major

    wq = params['wq'].astype(md); wk = params['wk'].astype(md)
    wv = params['wv'].astype(md); wo = params['wo'].astype(md)
    w1 = params['w1'].astype(md); w2 = params['w2'].astype(md)
    bq = row(params['bq']); bk = row(params['bk']); bv = row(params['bv'])
    bo = row(params['bo']); b1 = row(params['b1']); b2 = row(params['b2'])
    ln1a = row(params['ln1_a']); ln1b = row(params['ln1_b'])
    ln2a = row(params['ln2_a']); ln2b = row(params['ln2_b'])

    # VMEM budget: ~75% of physical (48 MiB on v7x's 64 MiB, 96 MiB on
    # v5e/v6e's 128 MiB), instead of a fixed 48 MiB limit.
    try:
        vmem_cap = pltpu.get_tpu_info().vmem_capacity_bytes
    except Exception:
        vmem_cap = 64 * 1024 * 1024
    vmem_limit = min(int(vmem_cap) * 3 // 4, 112 * 1024 * 1024)

    # Constant blocks (index_map always (0,0)): single-buffered -- the second
    # pipeline buffer buys no overlap and doubles weight VMEM.
    const2d = lambda shape: pl.BlockSpec(shape, lambda b, t: (0, 0),
                                         pipeline_mode=pl.Buffered(1))
    tile = lambda T: pl.BlockSpec((None, T, D), lambda b, t: (b, t, 0))
    cparams = pltpu.CompilerParams(
        dimension_semantics=("parallel", "parallel"),
        vmem_limit_bytes=vmem_limit)

    it_md = jnp.dtype(md).itemsize
    H = num_heads

    # ---- pass 1: K / V projection (tiled over sequence rows) ----
    cost1 = pl.CostEstimate(
        flops=int(4 * B * S * D * D),
        transcendentals=int(B * S),
        bytes_accessed=int(B * S * D * 4            # x (f32)
                           + 2 * D * D * it_md + 2 * D * 4   # wk, wv, biases
                           + 2 * B * S * D * it_md))         # K/V cache out

    k_cache, v_cache = pl.pallas_call(
        _kv_proj_kernel,
        out_shape=(jax.ShapeDtypeStruct((B, S, D), md),
                   jax.ShapeDtypeStruct((B, S, D), md)),
        grid_spec=pltpu.PrefetchScalarGridSpec(
            num_scalar_prefetch=0,
            grid=(B, S // TS),
            in_specs=[
                tile(TS),                                     # x
                const2d((1, D)), const2d((1, D)),             # ln1 a, b
                const2d((D, D)), const2d((1, D)),             # wk, bk
                const2d((D, D)), const2d((1, D)),             # wv, bv
            ],
            out_specs=(tile(TS), tile(TS)),
        ),
        compiler_params=cparams,
        cost_estimate=cost1,
    )(x, ln1a, ln1b, wk, bk, wv, bv)

    # ---- pass 2: attention + output proj + FFN, per query tile ----
    cost2 = pl.CostEstimate(
        flops=int(4 * B * S * D * D                 # Q proj + Wo
                  + 4 * B * S * S * D               # QK^T + PV (all heads)
                  + 4 * B * S * D * Dff),           # FFN
        transcendentals=int(B * H * S * S + 2 * B * S),
        bytes_accessed=int(2 * B * S * D * 4        # x in, out
                           + B * S * 4              # mask
                           + 2 * B * S * D * it_md  # K/V cache in
                           + (2 * D * D + 2 * D * Dff) * it_md
                           + (4 * D + 2 * Dff) * 4))

    kernel = functools.partial(_attn_ffn_kernel, num_heads=num_heads)
    return pl.pallas_call(
        kernel,
        out_shape=jax.ShapeDtypeStruct((B, S, D), x.dtype),
        grid_spec=pltpu.PrefetchScalarGridSpec(
            num_scalar_prefetch=0,
            grid=(B, S // TQ),
            in_specs=[
                tile(TQ),                                              # x tile
                pl.BlockSpec((None, 1, S), lambda b, t: (b, 0, 0)),    # mask
                # K/V: full S, change only at batch boundaries (default
                # double-buffering hides the once-per-batch DMA; switch to
                # pl.Buffered(1) on v7x long-S if VMEM-bound).
                pl.BlockSpec((None, S, D), lambda b, t: (b, 0, 0)),    # k
                pl.BlockSpec((None, S, D), lambda b, t: (b, 0, 0)),    # v
                const2d((1, D)), const2d((1, D)),                      # ln1 a, b
                const2d((D, D)), const2d((1, D)),                      # wq, bq
                const2d((D, D)), const2d((1, D)),                      # wo, bo
                const2d((1, D)), const2d((1, D)),                      # ln2 a, b
                const2d((D, Dff)), const2d((1, Dff)),                  # w1, b1
                const2d((Dff, D)), const2d((1, D)),                    # w2, b2
            ],
            out_specs=tile(TQ),
        ),
        compiler_params=cparams,
        cost_estimate=cost2,
    )(x, mask, k_cache, v_cache, ln1a, ln1b, wq, bq, wo, bo,
      ln2a, ln2b, w1, b1, w2, b2)


# ------------------- pure-JAX reference (mirrors kernel precision) -------------------
def _ref_layernorm(x, a, b):
    mean = jnp.mean(x, axis=-1, keepdims=True)
    var = jnp.sum((x - mean) ** 2, axis=-1, keepdims=True) / (x.shape[-1] - 1)
    return a * (x - mean) / (jnp.sqrt(var) + EPS) + b


def reference_forward(x, mask, p, *, num_heads, matmul_dtype=jnp.bfloat16):
    B, S, D = x.shape
    H = num_heads
    DK = D // H
    md = matmul_dtype
    f32 = jnp.float32

    wq, wk, wv, wo = (p['wq'].astype(md), p['wk'].astype(md),
                      p['wv'].astype(md), p['wo'].astype(md))
    w1, w2 = p['w1'].astype(md), p['w2'].astype(md)

    xn = _ref_layernorm(x, p['ln1_a'], p['ln1_b'])
    xn_c = xn.astype(md)
    q = jnp.einsum('bsd,de->bse', xn_c, wq, preferred_element_type=f32) + p['bq']
    q = (q * (1.0 / math.sqrt(DK))).astype(md)
    k = (jnp.einsum('bsd,de->bse', xn_c, wk, preferred_element_type=f32)
         + p['bk']).astype(md)
    v = (jnp.einsum('bsd,de->bse', xn_c, wv, preferred_element_type=f32)
         + p['bv']).astype(md)

    qh = q.reshape(B, S, H, DK)
    kh = k.reshape(B, S, H, DK)
    vh = v.reshape(B, S, H, DK)
    scores = jnp.einsum('bqhd,bkhd->bhqk', qh, kh, preferred_element_type=f32)
    scores = scores + (mask[:, :, None, :] - 1.0) * 1e9
    scores = scores - jnp.max(scores, axis=-1, keepdims=True)
    pr = jnp.exp(scores)
    pr = pr / jnp.sum(pr, axis=-1, keepdims=True)
    attn = jnp.einsum('bhqk,bkhd->bqhd', pr.astype(md), vh,
                      preferred_element_type=f32).reshape(B, S, D)
    attn_out = jnp.einsum('bsd,de->bse', attn.astype(md), wo,
                          preferred_element_type=f32) + p['bo']
    x1 = x + attn_out

    xn2 = _ref_layernorm(x1, p['ln2_a'], p['ln2_b'])
    h1 = jnp.einsum('bsd,df->bsf', xn2.astype(md), w1,
                    preferred_element_type=f32) + p['b1']
    h1 = jnp.maximum(h1, 0.0)
    ff = jnp.einsum('bsf,fd->bsd', h1.astype(md), w2,
                    preferred_element_type=f32) + p['b2']
    return x1 + ff


def make_params(key, D, Dff):
    keys = jax.random.split(key, 12)
    s = 0.05
    # Linear weights stored pre-transposed to (in, out) so kernels do x @ W
    # (equivalent to torch's x @ W.T with W of shape (out, in)).
    return {
        'ln1_a': jnp.ones((D,), jnp.float32),
        'ln1_b': jnp.zeros((D,), jnp.float32),
        'ln2_a': jnp.ones((D,), jnp.float32),
        'ln2_b': jnp.zeros((D,), jnp.float32),
        'wq': s * jax.random.normal(keys[0], (D, D), jnp.float32),
        'bq': s * jax.random.normal(keys[1], (D,), jnp.float32),
        'wk': s * jax.random.normal(keys[2], (D, D), jnp.float32),
        'bk': s * jax.random.normal(keys[3], (D,), jnp.float32),
        'wv': s * jax.random.normal(keys[4], (D, D), jnp.float32),
        'bv': s * jax.random.normal(keys[5], (D,), jnp.float32),
        'wo': s * jax.random.normal(keys[6], (D, D), jnp.float32),
        'bo': s * jax.random.normal(keys[7], (D,), jnp.float32),
        'w1': s * jax.random.normal(keys[8], (D, Dff), jnp.float32),
        'b1': s * jax.random.normal(keys[9], (Dff,), jnp.float32),
        'w2': s * jax.random.normal(keys[10], (Dff, D), jnp.float32),
        'b2': s * jax.random.normal(keys[11], (D,), jnp.float32),
    }


if __name__ == "__main__":
    # Small validation shapes (full-array blocks, which is legal); real
    # workloads should use D/Dff multiples of 128 and S a multiple of 8.
    B, S, D, H, Dff = 2, 8, 32, 4, 64

    key = jax.random.PRNGKey(0)
    kx, kp = jax.random.split(key)

    x = jax.random.normal(kx, (B, S, D), jnp.float32)
    # mask: (B, 1, S); batch 1 has its last two key positions masked out
    mask = jnp.ones((B, 1, S), jnp.float32)
    mask = mask.at[1, 0, S - 2:].set(0.0)

    params = make_params(kp, D, Dff)

    out = encoder_layer_forward(x, mask, params, num_heads=H)
    out = jax.block_until_ready(out)

    ref = reference_forward(x, mask, params, num_heads=H)
    # tolerance covers the approx (EUP) reciprocal in softmax; the bf16 matmul
    # quantization points are mirrored exactly in the reference.
    np.testing.assert_allclose(np.asarray(out), np.asarray(ref),
                               rtol=2e-3, atol=2e-3)

    print("KERNEL_OK")
</pallas_src>

<mosaic_0001>
module attributes {stable_mosaic.version = 11 : i64} {
  func.func @_kv_proj_kernel(%arg0: i32, %arg1: i32, %arg2: memref<1x8x32xf32, #tpu.memory_space<vmem>>, %arg3: memref<1x32xf32, #tpu.memory_space<vmem>>, %arg4: memref<1x32xf32, #tpu.memory_space<vmem>>, %arg5: memref<32x32xbf16, #tpu.memory_space<vmem>>, %arg6: memref<1x32xf32, #tpu.memory_space<vmem>>, %arg7: memref<32x32xbf16, #tpu.memory_space<vmem>>, %arg8: memref<1x32xf32, #tpu.memory_space<vmem>>, %arg9: memref<1x8x32xbf16, #tpu.memory_space<vmem>>, %arg10: memref<1x8x32xbf16, #tpu.memory_space<vmem>>) attributes {dimension_semantics = [#tpu.dimension_semantics<parallel>, #tpu.dimension_semantics<parallel>], iteration_bounds = array<i64: 2, 1>, scalar_prefetch = 0 : i64, scratch_operands = 0 : i64, tpu.core_type = #tpu.core_type<tc>, window_params = [{transform_indices = @transform_0, window_bounds = array<i64: 1, 8, 32>}, {pipeline_mode = #tpu.pipeline_mode<synchronous>, transform_indices = @transform_1, window_bounds = array<i64: 1, 32>}, {pipeline_mode = #tpu.pipeline_mode<synchronous>, transform_indices = @transform_2, window_bounds = array<i64: 1, 32>}, {pipeline_mode = #tpu.pipeline_mode<synchronous>, transform_indices = @transform_3, window_bounds = array<i64: 32, 32>}, {pipeline_mode = #tpu.pipeline_mode<synchronous>, transform_indices = @transform_4, window_bounds = array<i64: 1, 32>}, {pipeline_mode = #tpu.pipeline_mode<synchronous>, transform_indices = @transform_5, window_bounds = array<i64: 32, 32>}, {pipeline_mode = #tpu.pipeline_mode<synchronous>, transform_indices = @transform_6, window_bounds = array<i64: 1, 32>}, {transform_indices = @transform_7, window_bounds = array<i64: 1, 8, 32>}, {transform_indices = @transform_8, window_bounds = array<i64: 1, 8, 32>}]} {
    %c0 = arith.constant 0 : index
    %c0_0 = arith.constant 0 : index
    %c0_1 = arith.constant 0 : index
    %0 = vector.load %arg2[%c0, %c0_0, %c0_1] : memref<1x8x32xf32, #tpu.memory_space<vmem>>, vector<1x8x32xf32>
    %1 = vector.shape_cast %0 : vector<1x8x32xf32> to vector<8x32xf32>
    %c0_2 = arith.constant 0 : index
    %c0_3 = arith.constant 0 : index
    %2 = vector.load %arg3[%c0_2, %c0_3] : memref<1x32xf32, #tpu.memory_space<vmem>>, vector<1x32xf32>
    %c0_4 = arith.constant 0 : index
    %c0_5 = arith.constant 0 : index
    %3 = vector.load %arg4[%c0_4, %c0_5] : memref<1x32xf32, #tpu.memory_space<vmem>>, vector<1x32xf32>
    %cst = arith.constant dense<0.000000e+00> : vector<8xf32>
    %4 = vector.multi_reduction <add>, %1, %cst [1] : vector<8x32xf32> to vector<8xf32>
    %5 = vector.shape_cast %4 : vector<8xf32> to vector<8x1xf32>
    %cst_6 = arith.constant 3.200000e+01 : f32
    %6 = vector.broadcast %cst_6 : f32 to vector<8x1xf32>
    %7 = arith.divf %5, %6 : vector<8x1xf32>
    %8 = vector.broadcast %7 : vector<8x1xf32> to vector<8x32xf32>
    %9 = arith.subf %1, %8 : vector<8x32xf32>
    %10 = arith.mulf %9, %9 : vector<8x32xf32>
    %cst_7 = arith.constant dense<0.000000e+00> : vector<8xf32>
    %11 = vector.multi_reduction <add>, %10, %cst_7 [1] : vector<8x32xf32> to vector<8xf32>
    %12 = vector.shape_cast %11 : vector<8xf32> to vector<8x1xf32>
    %cst_8 = arith.constant 0.0322580636 : f32
    %13 = vector.broadcast %cst_8 : f32 to vector<8x1xf32>
    %14 = arith.mulf %12, %13 : vector<8x1xf32>
    %15 = math.sqrt %14 : vector<8x1xf32>
    %16 = vector.broadcast %7 : vector<8x1xf32> to vector<8x32xf32>
    %17 = arith.subf %1, %16 : vector<8x32xf32>
    %18 = vector.broadcast %2 : vector<1x32xf32> to vector<8x32xf32>
    %19 = arith.mulf %18, %17 : vector<8x32xf32>
    %cst_9 = arith.constant 9.99999997E-7 : f32
    %20 = vector.broadcast %cst_9 : f32 to vector<8x1xf32>
    %21 = arith.addf %15, %20 : vector<8x1xf32>
    %22 = vector.broadcast %21 : vector<8x1xf32> to vector<8x32xf32>
    %23 = arith.divf %19, %22 : vector<8x32xf32>
    %24 = vector.broadcast %3 : vector<1x32xf32> to vector<8x32xf32>
    %25 = arith.addf %23, %24 : vector<8x32xf32>
    %26 = arith.truncf %25 : vector<8x32xf32> to vector<8x32xbf16>
    %c0_10 = arith.constant 0 : index
    %c0_11 = arith.constant 0 : index
    %27 = vector.load %arg5[%c0_10, %c0_11] : memref<32x32xbf16, #tpu.memory_space<vmem>>, vector<32x32xbf16>
    %cst_12 = arith.constant dense<0.000000e+00> : vector<8x32xf32>
    %28 = tpu.matmul %26, %27, %cst_12 {dimension_numbers = #tpu.dot_dimension_numbers<[1], [0], [0], [1], [0, 0, 1, 1], [], []>} : vector<8x32xbf16>, vector<32x32xbf16>, vector<8x32xf32> -> vector<8x32xf32>
    %c0_13 = arith.constant 0 : index
    %c0_14 = arith.constant 0 : index
    %29 = vector.load %arg6[%c0_13, %c0_14] : memref<1x32xf32, #tpu.memory_space<vmem>>, vector<1x32xf32>
    %30 = vector.broadcast %29 : vector<1x32xf32> to vector<8x32xf32>
    %31 = arith.addf %28, %30 : vector<8x32xf32>
    %c0_15 = arith.constant 0 : index
    %c0_16 = arith.constant 0 : index
    %32 = vector.load %arg7[%c0_15, %c0_16] : memref<32x32xbf16, #tpu.memory_space<vmem>>, vector<32x32xbf16>
    %cst_17 = arith.constant dense<0.000000e+00> : vector<8x32xf32>
    %33 = tpu.matmul %26, %32, %cst_17 {dimension_numbers = #tpu.dot_dimension_numbers<[1], [0], [0], [1], [0, 0, 1, 1], [], []>} : vector<8x32xbf16>, vector<32x32xbf16>, vector<8x32xf32> -> vector<8x32xf32>
    %c0_18 = arith.constant 0 : index
    %c0_19 = arith.constant 0 : index
    %34 = vector.load %arg8[%c0_18, %c0_19] : memref<1x32xf32, #tpu.memory_space<vmem>>, vector<1x32xf32>
    %35 = vector.broadcast %34 : vector<1x32xf32> to vector<8x32xf32>
    %36 = arith.addf %33, %35 : vector<8x32xf32>
    %37 = arith.truncf %31 : vector<8x32xf32> to vector<8x32xbf16>
    %c0_20 = arith.constant 0 : index
    %c0_21 = arith.constant 0 : index
    %c0_22 = arith.constant 0 : index
    %38 = vector.load %arg9[%c0_20, %c0_21, %c0_22] : memref<1x8x32xbf16, #tpu.memory_space<vmem>>, vector<1x8x32xbf16>
    %39 = vector.shape_cast %38 : vector<1x8x32xbf16> to vector<8x32xbf16>
    %40 = vector.shape_cast %37 : vector<8x32xbf16> to vector<1x8x32xbf16>
    tpu.vector_store %arg9[%c0_20, %c0_21, %c0_22], %40 {strides = array<i32>} : memref<1x8x32xbf16, #tpu.memory_space<vmem>>, vector<1x8x32xbf16>,
    %41 = arith.truncf %36 : vector<8x32xf32> to vector<8x32xbf16>
    %c0_23 = arith.constant 0 : index
    %c0_24 = arith.constant 0 : index
    %c0_25 = arith.constant 0 : index
    %42 = vector.load %arg10[%c0_23, %c0_24, %c0_25] : memref<1x8x32xbf16, #tpu.memory_space<vmem>>, vector<1x8x32xbf16>
    %43 = vector.shape_cast %42 : vector<1x8x32xbf16> to vector<8x32xbf16>
    %44 = vector.shape_cast %41 : vector<8x32xbf16> to vector<1x8x32xbf16>
    tpu.vector_store %arg10[%c0_23, %c0_24, %c0_25], %44 {strides = array<i32>} : memref<1x8x32xbf16, #tpu.memory_space<vmem>>, vector<1x8x32xbf16>,
    return
  }
  func.func @transform_0(%arg0: i32, %arg1: i32) -> (i32, i32, i32) {
    %c0_i32 = arith.constant 0 : i32
    %c0_i32_0 = arith.constant 0 : i32
    return %arg0, %arg1, %c0_i32 : i32, i32, i32
  }
  func.func @transform_1(%arg0: i32, %arg1: i32) -> (i32, i32) {
    %c0_i32 = arith.constant 0 : i32
    %c0_i32_0 = arith.constant 0 : i32
    %c0_i32_1 = arith.constant 0 : i32
    return %c0_i32, %c0_i32_0 : i32, i32
  }
  func.func @transform_2(%arg0: i32, %arg1: i32) -> (i32, i32) {
    %c0_i32 = arith.constant 0 : i32
    %c0_i32_0 = arith.constant 0 : i32
    %c0_i32_1 = arith.constant 0 : i32
    return %c0_i32, %c0_i32_0 : i32, i32
  }
  func.func @transform_3(%arg0: i32, %arg1: i32) -> (i32, i32) {
    %c0_i32 = arith.constant 0 : i32
    %c0_i32_0 = arith.constant 0 : i32
    %c0_i32_1 = arith.constant 0 : i32
    return %c0_i32, %c0_i32_0 : i32, i32
  }
  func.func @transform_4(%arg0: i32, %arg1: i32) -> (i32, i32) {
    %c0_i32 = arith.constant 0 : i32
    %c0_i32_0 = arith.constant 0 : i32
    %c0_i32_1 = arith.constant 0 : i32
    return %c0_i32, %c0_i32_0 : i32, i32
  }
  func.func @transform_5(%arg0: i32, %arg1: i32) -> (i32, i32) {
    %c0_i32 = arith.constant 0 : i32
    %c0_i32_0 = arith.constant 0 : i32
    %c0_i32_1 = arith.constant 0 : i32
    return %c0_i32, %c0_i32_0 : i32, i32
  }
  func.func @transform_6(%arg0: i32, %arg1: i32) -> (i32, i32) {
    %c0_i32 = arith.constant 0 : i32
    %c0_i32_0 = arith.constant 0 : i32
    %c0_i32_1 = arith.constant 0 : i32
    return %c0_i32, %c0_i32_0 : i32, i32
  }
  func.func @transform_7(%arg0: i32, %arg1: i32) -> (i32, i32, i32) {
    %c0_i32 = arith.constant 0 : i32
    %c0_i32_0 = arith.constant 0 : i32
    return %arg0, %arg1, %c0_i32 : i32, i32, i32
  }
  func.func @transform_8(%arg0: i32, %arg1: i32) -> (i32, i32, i32) {
    %c0_i32 = arith.constant 0 : i32
    %c0_i32_0 = arith.constant 0 : i32
    return %arg0, %arg1, %c0_i32 : i32, i32, i32
  }
}

</mosaic_0001>

<bundles_post_ra>
// kernel: tpu_custom_call.1
= control target key start
LH: loop header
LB: loop body
LE: loop exit
PB: predicated region body
PF: predicated region fallthrough
CT: control target
= control target key end

     0   :  { %s1354_s0 = inlined_call_operand.hbm [shape: f32[2,8,32], index: 0, kind: input, shape index: {}]   ;;  %s1355_s1 = inlined_call_operand.vmem [shape: f32[1,32], index: 1, kind: input, shape index: {}]   ;;  %s1356_s2 = inlined_call_operand.vmem [shape: f32[1,32], index: 2, kind: input, shape index: {}]   ;;  %s1357_s3 = inlined_call_operand.hbm [shape: bf16[32,32], index: 3, kind: input, shape index: {}]   ;;  %s1358_s4 = inlined_call_operand.vmem [shape: f32[1,32], index: 4, kind: input, shape index: {}]   ;;  %s1359_s5 = inlined_call_operand.hbm [shape: bf16[32,32], index: 5, kind: input, shape index: {}]   ;;  %s1360_s6 = inlined_call_operand.vmem [shape: f32[1,32], index: 6, kind: input, shape index: {}]   ;;  %s1361_s7 = inlined_call_operand.hbm [shape: bf16[2,8,32], index: 7, kind: output, shape index: {0}]   ;;  %s1362_s8 = inlined_call_operand.hbm [shape: bf16[2,8,32], index: 8, kind: output, shape index: {1}]  }
   0x1   :  { %1368 = sst [smem:[#allocation17_spill]] %s1357_s3 }
   0x2   :  { %1369 = sst [smem:[#allocation18_spill]] %s1359_s5 }
   0x3   :  { %14 = vsyncpa [#allocation3], 0 }
   0x4   :  { %16 = vsyncpa [#allocation3 + $0x1], 0 }
   0x5   :  { %17 = vsyncpa [#allocation6], 0 }
   0x6   :  { %18 = vsyncpa [#allocation4], 0 }
   0x7   :  { %20 = vsyncpa [#allocation4 + $0x1], 0 }
   0x8   :  { %21 = vsyncpa [#allocation10], 0 }
   0x9   :  { %23 = vsyncpa [#allocation10 + $0x1], 0  ;;  %s1123_s27 = smov 0   ;;  %s1125_s28 = smov 0  }
   0xa   :  { %s1127_s29 = smov 0   ;;  %s1129_s30 = smov 0  }
   0xb   :  { %s1131_s9 = smov 0   ;;  %s1133_s10 = smov 0  }
   0xc LB: > { %1370 = sst [smem:[#allocation15_spill]] %s1063_s9  ;;  %s721_s11 = sadd.s32 4294967295, %s1067_s10   ;;  %s1067_s10 = sphi %s1133_s10, %s29_s10   ;;  %s1063_s9 = sphi %s1131_s9, %s1387_s9   ;;  %s1059_s30 = sphi %s1129_s30, %s1386_s30   ;;  %s1055_s29 = sphi %s1127_s29, %s1390_s29   ;;  %s1051_s28 = sphi %s1125_s28, %s1389_s28   ;;  %s1047_s27 = sphi %s1123_s27, %s1388_s27  }
   0xd   : > { %s722_s12 = sadd.s32 4294967294, %s1067_s10   ;;  %p63_p0 = scmp.ne.s32.totalorder %s1051_s28, %s1047_s27 }
   0xe   : > { %p1157_p1 = scmp.eq.s32.totalorder %s721_s11, 0  ;;  %p1161_p2 = scmp.eq.s32.totalorder %s721_s11, 1 }
   0xf   : > { %p221_p3 = scmp.eq.s32.totalorder %s722_s12, 1  ;;  %p723_p5 = scmp.ge.s32.totalorder %s1067_s10, 1 }
  0x10   : > { %s1371_s13 = scalar_select %p1157_p1, 1, 0 }
  0x11   : > { %p1167_p4 = por %p1157_p1, %p63_p0  ;;  %p1172_p6 = por %p221_p3, %p63_p0 }
  0x12   : > { %p256_p7 = scmp.lt.s32.totalorder %s1067_s10, 3  ;;  %s1069_s18 = smov [#allocation5]  }
  0x13   : > { %s1373_s15 = scalar_select %p1167_p4, 1, 0 }
  0x14   : > { %s1374_s16 = scalar_select %p1172_p6, 1, 0 }
  0x15   : > { %p1177_p8 = pnand %p723_p5, %p256_p7  ;;  %s274_s19 = sshll.u32 %s1069_s18, 4  ;;  %s275_s19 = int_to_ptr.vmem [resolvable:$true] %s274_s19 }
  0x16   : > { %s1070_s21 = smov [#allocation7]   ;;  %s884_s23 = scalar_lea.vmem %s275_s19, 256 }
  0x17   : > { %p787_p9 = pneg %p1177_p8  ;;  %s290_s22 = sshll.u32 %s1070_s21, 4  ;;  %s291_s22 = int_to_ptr.vmem [resolvable:$true] %s290_s22 }
  0x18   : > { %p885_p13 = scmp.ne.s32.totalorder %s275_s19, %s884_s23  ;;  %p892_p5 = scmp.lt.s32.totalorder %s275_s19, %s275_s19 }
  0x19   : > { %p1186_p11 = pnand %p787_p9, %p1157_p1  ;;  %p893_p7 = scmp.lt.s32.totalorder %s884_s23, %s884_s23 }
  0x1b   : > { %p875_p12 = pneg %p1186_p11  ;;  %p894_p10 = por %p893_p7, %p892_p5 }
  0x1d   : > { %p887_p0 = pnand %p885_p13, %p875_p12 }
  0x1f   : > { %p888_p3 = pneg %p887_p0 }
  0x21   : > { %p895_p9 = pnand %p894_p10, %p888_p3 }
  0x23   : > { %898 = shalt.err (!%p895_p9)
}
  0x24   : > { %s1071_s24 = smov 64   ;;  %s1072_s25 = smov 4  }
  0x25   : > { %s1377_s3 = sld [smem:[#allocation17_spill]]  ;;  %s910_s12 = scalar_lea.vmem %s291_s22, 256 }
  0x26   : > { %p911_p6 = scmp.ne.s32.totalorder %s291_s22, %s910_s12  ;;  %p918_p1 = scmp.lt.s32.totalorder %s291_s22, %s291_s22 }
  0x27   : > { %p919_p4 = scmp.lt.s32.totalorder %s910_s12, %s910_s12 }
  0x28   : > { %p913_p13 = pnand %p911_p6, %p875_p12 }
  0x29   : > { %p920_p5 = por %p919_p4, %p918_p1 }
  0x2a   : > { %p914_p0 = pneg %p913_p13 }
  0x2b   : > { %790 = dma.hbm_to_vmem [thread:$0]  (!%p1186_p11), %s1377_s3, 256, %s275_s19, [#allocation6], %s1071_s24, %s1071_s24, %s1072_s25  }
  0x2c   : > { %p921_p10 = pnand %p920_p5, %p914_p0 }
  0x2e   : > { %924 = shalt.err (!%p921_p10)
}
  0x2f   : > { %s1378_s5 = sld [smem:[#allocation18_spill]]  ;;  %s41_s19 = sadd.s32 1, %s1063_s9 }
  0x30   : > { %s50_s23 = sadd.s32 1, %s1055_s29  ;;  %p43_p1 = scmp.ge.s32.totalorder %s41_s19, 2 }
  0x31   : > { %p57_p4 = scmp.ne.s32.totalorder %s1055_s29, %s1051_s28  ;;  %p58_p6 = scmp.eq.s32.totalorder %s1067_s10, 0 }
  0x32   : > { %p807_p12 = scmp.lt.s32.totalorder %s1067_s10, 2  ;;  %s1392_s19 = smov (%p43_p1, %s41_s19), 0 }
  0x33   : > { %1379 = sst [smem:[#allocation16_spill]] %s1392_s19  ;;  %p59_p3 = por %p58_p6, %p57_p4 }
  0x34   : > { %p1218_p7 = por %p1161_p2, %p57_p4  ;;  %s45_s26 = ssub.s32 %s1063_s9, %s1392_s19 }
  0x35   : > { %793 = dma.hbm_to_vmem [thread:$0]  (!%p1186_p11), %s1378_s5, 256, %s291_s22, [#allocation6], %s1071_s24, %s1071_s24, %s1072_s25  }
  0x36   : > { %s307_s11 = sand.u32 1, %s1055_s29   ;;  %p48_p9 = scmp.eq.s32.totalorder %s45_s26, 0 }
  0x37   : > { %s727_s22 = sshll.u32 %s307_s11, 3  ;;  %s728_s24 = sshll.u32 %s1063_s9, 7 }
  0x38   : > { %s1227_s25 = scalar_select %p48_p9, %s1055_s29, %s50_s23  }
  0x39   : > { %s317_s21 = scalar_lea.hbm %s1354_s0, %s728_s24  ;;  %s311_s3 = scalar_lea.vmem [#allocation2], %s727_s22 }
  0x3a   : > { %s319_s5 = sshll.u32 %s311_s3, 4  ;;  %p1234_p11 = pnand %p807_p12, %p59_p3  ;;  %s320_s5 = int_to_ptr.vmem [resolvable:$true] %s319_s5 }
  0x3b   : > { %s308_s19 = scalar_lea.sflag [#allocation3], %s307_s11  ;;  %s938_s26 = scalar_lea.vmem %s320_s5, 128 }
  0x3c   : > { %p927_p2 = pneg %p1234_p11  ;;  %p939_p13 = scmp.ne.s32.totalorder %s320_s5, %s938_s26 }
  0x3d   : > { %s1073_s23 = smov [#allocation2]  }
  0x3e   : > { %p941_p0 = pnand %p939_p13, %p927_p2  ;;  %s943_s9 = sshll.u32 %s1073_s23, 4  ;;  %s944_s9 = int_to_ptr.vmem [resolvable:$false] %s943_s9 }
  0x3f   : > { %s945_s24 = scalar_lea.vmem %s944_s9, 256  ;;  %p946_p10 = scmp.lt.s32.totalorder %s320_s5, %s944_s9 }
  0x40   : > { %p942_p5 = pneg %p941_p0  ;;  %p947_p1 = scmp.lt.s32.totalorder %s945_s24, %s938_s26 }
  0x42   : > { %p948_p4 = por %p947_p1, %p946_p10 }
  0x44   : > { %p949_p6 = pnand %p948_p4, %p942_p5 }
  0x46   : > { %952 = shalt.err (!%p949_p6)
}
  0x47   : > { %797 = dma.hbm_to_vmem [thread:$0]  (!%p1234_p11), %s317_s21, 128, %s320_s5, %s308_s19  }
  0x48   : > { %328 = sbr.rel (%p1177_p8) target bundleno = 641 (0x281), region = 48  ;;  %s1245_s3 = sand.u32 (!%p1177_p8), 1, %s1051_s28  }
  0x49   : > { %s730_s11 = sshll.u32 (!%p1177_p8), %s1245_s3, 3  ;;  %s331_s22 = scalar_lea.sflag (!%p1177_p8), [#allocation3], %s1245_s3 }
  0x4a   : > { %s334_s12 = scalar_lea.vmem (!%p1177_p8), [#allocation2], %s730_s11  ;;  %p1382_p12 = scmp.ne.s32.totalorder (!%p1177_p8), %s1373_s15, 0 }
  0x4d   : > { %1030 = dma.done.wait (%p1382_p12), %s331_s22, 128  }
  0x4e   : > { %1032 = vsyncadd (%p1382_p12), %s331_s22, 4294967168  ;;  %p1383_p3 = scmp.ne.s32.totalorder %s1371_s13, 0 }
  0x50   : > { %1034 = dma.done.wait (%p1383_p3), [#allocation6], 512  }
  0x51   : > { %1036 = vsyncadd (%p1383_p3), [#allocation6], 4294966784  ;;  %vm384_vm0 = vcmask 261120   ;;  %v381_v0 = vld [vmem:[%s334_s12] sm:$0xff]  ;;  %v865_v7 = vld [vmem:[#allocation5 + $0x8] sm:$0xff]   ;;  %v1074_v9 = vmov 0.0  }
  0x52   : > { %v385_v1 = vsel %vm384_vm0, %v381_v0, 0.0  ;;  %v866_v8 = vld [vmem:[#allocation7 + $0x8] sm:$0xff]   ;;  %757 = vmatprep.subr.bf16.mxu0 %v1074_v9  ;;  %765 = vmatprep.subr.bf16.mxu1 %v1074_v9  ;;  %v867_v10 = vld [vmem:[#allocation5] sm:$0xff]   ;;  %v868_v11 = vld [vmem:[#allocation7] sm:$0xff]   ;;  %vm1075_vm1 = vmmov 0   ;;  %s733_s17 = sshll.u32 %s1245_s3, 2 }
  0x53   : > { %386 = vadd.xlane.f32.xlu0 %v385_v1  ;;  %758 = vmatpush3.bf16.msra.mxu0 %v865_v7  ;;  %v735_v20 = vld [vmem:[%s1355_s1] ss:$0 sm:$0xff]  ;;  %s747_s26 = sshll.u32 %s1059_s30, 6  ;;  %s372_s23 = scalar_lea.vmem [#allocation8], %s733_s17  ;;  %vm551_vm4 = vcmask 257024  }
  0x54   : > { %766 = vmatpush3.bf16.msra.mxu1 %v866_v8  ;;  %759 = vmatprep.subr.bf16.mxu0 %v1074_v9  ;;  %v736_v23 = vld [vmem:[%s1356_s2] ss:$0 sm:$0xff]  ;;  %s575_s24 = sshll.u32 %s372_s23, 4  ;;  %s379_s11 = scalar_lea.vmem [#allocation9], %s733_s17  ;;  %s1280_s24 = int_to_ptr.vmem [resolvable:$true] %s575_s24 }
  0x55   : > { %767 = vmatprep.subr.bf16.mxu1 %v1074_v9  ;;  %761 = vmatprep.mubr.msk.bf16.mxu0 %vm1075_vm1, %v1074_v9  ;;  %v737_v27 = vld [vmem:[%s1358_s4] ss:$0 sm:$0xff]  ;;  %s589_s22 = sshll.u32 %s379_s11, 4  ;;  %s1278_s9 = scalar_lea.hbm %s1361_s7, %s747_s26  ;;  %s1287_s22 = int_to_ptr.vmem [resolvable:$true] %s589_s22 }
  0x56   : > { %769 = vmatprep.mubr.msk.bf16.mxu1 %vm1075_vm1, %v1074_v9  ;;  %v741_v28 = vld [vmem:[%s1360_s6] ss:$0 sm:$0xff]  ;;  %s1285_s15 = scalar_lea.hbm %s1362_s8, %s747_s26  ;;  %s556_s17 = scalar_lea.sflag [#allocation4], %s1245_s3 }
  0x57   : > { %760 = vmatpush3.bf16.msra.mxu0 %v867_v10  ;;  %s953_s19 = scalar_lea.vmem %s1280_s24, 64  ;;  %s1076_s18 = smov [#allocation8]  }
  0x58   : > { %768 = vmatpush3.bf16.msra.mxu1 %v868_v11  ;;  %p954_p8 = scmp.ne.s32.totalorder %s1280_s24, %s953_s19  ;;  %s957_s21 = sshll.u32 %s1076_s18, 4  ;;  %s958_s21 = int_to_ptr.vmem [resolvable:$false] %s957_s21 }
  0x59   : > { %s959_s14 = scalar_lea.vmem %s958_s21, 128  ;;  %p960_p2 = scmp.lt.s32.totalorder %s1280_s24, %s958_s21 }
  0x5a   : > { %p955_p9 = pnand %p954_p8, %p1218_p7  ;;  %p961_p13 = scmp.lt.s32.totalorder %s959_s14, %s953_s19 }
  0x5c   : > { %p956_p11 = pneg %p955_p9  ;;  %p962_p0 = por %p961_p13, %p960_p2 }
  0x5e   : > { %p963_p5 = pnand %p962_p0, %p956_p11 }
  0xdc   : > { %v387_v2 = vpop.xlane.xlu0 %386 }
  0xdd   : > { %v389_v3 = vmul.f32 0.03125, %v387_v2 }
  0xdf   : > { %v390_v4 = vsub.f32 %v381_v0, %v389_v3 }
  0xe1   : > { %v391_v5 = vmul.f32 %v390_v4, %v390_v4  ;;  %v409_v21 = vmul.f32 %v735_v20, %v390_v4 }
  0xe3   : > { %v392_v6 = vsel %vm384_vm0, %v391_v5, 0.0 }
  0xe4   : > { %393 = vadd.xlane.f32.xlu0 %v392_v6 }
 0x16d   : > { %v394_v12 = vpop.xlane.xlu0 %393 }
 0x16e   : > { %v395_v13 = vmul.f32 0.032258064, %v394_v12 }
 0x170   : > { %869 = vrsqrt.f32 %v395_v13  ;;  %vm398_vm2 = vcmp.eq.f32.partialorder %v395_v13, inf  ;;  %v401_v16 = vand.u32 2147483648, %v395_v13  ;;  %vm400_vm3 = vcmp.eq.f32.partialorder %v395_v13, 0.0 }
 0x17d   : > { %v870_v14 = vpop.eup %869 }
 0x17e   : > { %v397_v15 = vmul.f32 %v870_v14, %v395_v13 }
 0x180   : > { %v399_v17 = vsel %vm398_vm2, %v395_v13, %v397_v15 }
 0x181   : > { %v402_v18 = vsel %vm400_vm3, %v401_v16, %v399_v17 }
 0x182   : > { %v410_v19 = vadd.f32 1e-06, %v402_v18 }
 0x184   : > { %871 = vrcp.f32 %v410_v19 }
 0x191   : > { %v872_v22 = vpop.eup %871 }
 0x192   : > { %v412_v24 = vmul.f32 %v872_v22, %v409_v21 }
 0x194   : > { %v419_v25 = vadd.f32 %v736_v23, %v412_v24 }
 0x196   : > { %v420_v26 = vpack.c.bf16 %v419_v25, %v419_v25 }
 0x198   : > { %762 = vmatmul.mubr.msk.bf16.vlgmr.msra.gmra.mxu0 %vm384_vm0, %v420_v26  ;;  %770 = vmatmul.mubr.msk.bf16.vlgmr.msra.gmra.mxu1 %vm384_vm0, %v420_v26 }
 0x258   : > { %v481_v29 = vpop.f32.mrf.mxu0  ;;  %v544_v30 = vpop.f32.mrf.mxu1 }
 0x259   : > { %v482_v31 = vadd.f32 %v737_v27, %v481_v29  ;;  %v545_v32 = vadd.f32 %v741_v28, %v544_v30 }
 0x25a   : > { %v763_v33 = vpop.f32.mrf.mxu0  ;;  %v771_v34 = vpop.f32.mrf.mxu1 }
 0x25b   : > { %v550_v35 = vpack.c.bf16 %v482_v31, %v482_v31  ;;  %v553_v36 = vpack.c.bf16 %v545_v32, %v545_v32 }
 0x25c   : > { %v484_v37 = vpop.f32.mrf.mxu0  ;;  %v547_v38 = vpop.f32.mrf.mxu1 }
 0x25d   : > { %552 = vst.msk [vmem:[%s372_s23] sm:$0xf] %vm551_vm4, %v550_v35  ;;  %554 = vst.msk [vmem:[%s379_s11] sm:$0xf] %vm551_vm4, %v553_v36 }
 0x25e   : > { %v764_v39 = vpop.f32.mrf.mxu0  ;;  %v772_v40 = vpop.f32.mrf.mxu1 }
 0x25f   : > { %966 = shalt.err (!%p963_p5)
}
 0x260   : > { %s967_s26 = scalar_lea.hbm %s1278_s9, 64  ;;  %s971_s12 = scalar_lea.hbm %s1361_s7, 128 }
 0x261   : > { %p968_p10 = scmp.ne.s32.totalorder %s1278_s9, %s967_s26  ;;  %p972_p6 = scmp.lt.s32.totalorder %s1278_s9, %s1361_s7 }
 0x262   : > { %p973_p12 = scmp.lt.s32.totalorder %s971_s12, %s967_s26 }
 0x263   : > { %p969_p1 = pnand %p968_p10, %p1218_p7 }
 0x264   : > { %p974_p3 = por %p973_p12, %p972_p6 }
 0x265   : > { %p970_p4 = pneg %p969_p1 }
 0x267   : > { %p975_p8 = pnand %p974_p3, %p970_p4 }
 0x269   : > { %978 = shalt.err (!%p975_p8)
}
 0x26a   : > { %783 = dma.vmem_to_hbm [thread:$0]  (%p1218_p7), %s1280_s24, 64, %s1278_s9, %s556_s17  }
 0x26b   : > { %s561_s13 = scalar_lea.sflag [#allocation10], %s1245_s3  ;;  %s979_s19 = scalar_lea.vmem %s1287_s22, 64 }
 0x26c   : > { %p980_p9 = scmp.ne.s32.totalorder %s1287_s22, %s979_s19  ;;  %s1077_s18 = smov [#allocation9]  }
 0x26d   : > { %s983_s21 = sshll.u32 %s1077_s18, 4  ;;  %s984_s21 = int_to_ptr.vmem [resolvable:$false] %s983_s21 }
 0x26e   : > { %p981_p11 = pnand %p980_p9, %p1218_p7  ;;  %s985_s14 = scalar_lea.vmem %s984_s21, 128 }
 0x26f   : > { %p986_p13 = scmp.lt.s32.totalorder %s1287_s22, %s984_s21  ;;  %p987_p0 = scmp.lt.s32.totalorder %s985_s14, %s979_s19 }
 0x270   : > { %p982_p2 = pneg %p981_p11 }
 0x271   : > { %p988_p5 = por %p987_p0, %p986_p13 }
 0x273   : > { %p989_p10 = pnand %p988_p5, %p982_p2 }
 0x275   : > { %992 = shalt.err (!%p989_p10)
}
 0x276   : > { %s993_s24 = scalar_lea.hbm %s1285_s15, 64  ;;  %s997_s17 = scalar_lea.hbm %s1362_s8, 128 }
 0x277   : > { %p994_p1 = scmp.ne.s32.totalorder %s1285_s15, %s993_s24  ;;  %p998_p12 = scmp.lt.s32.totalorder %s1285_s15, %s1362_s8 }
 0x278   : > { %p999_p3 = scmp.lt.s32.totalorder %s997_s17, %s993_s24 }
 0x279   : > { %p995_p4 = pnand %p994_p1, %p1218_p7 }
 0x27a   : > { %p1000_p8 = por %p999_p3, %p998_p12 }
 0x27b   : > { %p996_p6 = pneg %p995_p4 }
 0x27d   : > { %p1001_p9 = pnand %p1000_p8, %p996_p6 }
 0x27f   : > { %1004 = shalt.err (!%p1001_p9)
}
 0x280   : > { %784 = dma.vmem_to_hbm [thread:$0]  (%p1218_p7), %s1287_s22, 64, %s1285_s15, %s561_s13  }
 0x281 PF: > { %s601_s11 = sand.u32 1, %s1047_s27   ;;  %p1384_p11 = scmp.ne.s32.totalorder %s1374_s16, 0 }
 0x282   : > { %p1385_p2 = scmp.ge.s32.totalorder %s1067_s10, 2  ;;  %s602_s12 = scalar_lea.sflag [#allocation4], %s601_s11 }
 0x284   : > { %p799_p13 = pnand %p1385_p2, %p1384_p11 }
 0x286   : > { %p800_p0 = pneg %p799_p13 }
 0x288   : > { %1038 = dma.done.wait (%p800_p0), %s602_s12, 64  }
 0x289   : > { %1040 = vsyncadd (%p800_p0), %s602_s12, 4294967232  ;;  %s611_s5 = scalar_lea.sflag [#allocation10], %s601_s11 }
 0x28a   : > { %1042 = dma.done.wait (%p800_p0), %s611_s5, 64  }
 0x28b   : > { %1044 = vsyncadd (%p800_p0), %s611_s5, 4294967232  ;;  %s29_s10 = sadd.s32 1, %s1067_s10   ;;  %s1386_s30 = sld [smem:[#allocation15_spill]] }
 0x28c   : > { %p26_p5 = scmp.ge.s32.totalorder %s29_s10, 4   ;;  %s1387_s9 = sld [smem:[#allocation16_spill]] }
 0x28d   : > { %s1388_s27 = smov %s1051_s28  ;;  %s1389_s28 = smov %s1055_s29 }
 0x28e   : > { %s1390_s29 = smov %s1227_s25  ;;  %28 = sbr.rel (!%p26_p5) target bundleno = 12 (0xc), region = 118 }
 0x293   :  { %616 = vsyncpa [#allocation3], 1 }
 0x294   :  { %618 = vsyncpa [#allocation3 + $0x1], 1 }
 0x295   :  { %619 = vsyncpa [#allocation6], 1 }
 0x296   :  { %620 = vsyncpa [#allocation4], 1 }
 0x297   :  { %622 = vsyncpa [#allocation4 + $0x1], 1 }
 0x298   :  { %623 = vsyncpa [#allocation10], 1 }
 0x299   :  { %625 = vsyncpa [#allocation10 + $0x1], 1 }

</bundles_post_ra>
